<compile_context>
chip_gen: v7x
topology: tpu7x:2x2x1
jax: 0.10.0
libtpu: 0.0.40
codegen_flags: <defaults>
</compile_context>

<pallas_src>
import functools

import jax
import jax.numpy as jnp
from jax import lax
from jax.experimental import pallas as pl
from jax.experimental.pallas import tpu as pltpu


def _round_up(n, m):
    return ((n + m - 1) // m) * m


def _physical_vmem_bytes():
    try:
        return int(pltpu.get_tpu_info().vmem_capacity_bytes)
    except Exception:
        return 64 << 20  # conservative (v7x per-TensorCore)


def _default_swish_dtype(matmul_dtype):
    # bf16 VPU/EUP exists on v6e/v7x; v5e (and older) should stay f32.
    if jnp.dtype(matmul_dtype) != jnp.dtype(jnp.bfloat16):
        return jnp.float32
    try:
        kind = jax.devices()[0].device_kind.lower()
    except Exception:
        kind = ""
    if any(v in kind for v in ("v2", "v3", "v4", "v5")):
        return jnp.float32
    return jnp.bfloat16


def _pick_tile(M, tm):
    """Row tile: multiple of 8 sublanes, and >= 2 grid steps when possible (v7x)."""
    Mp8 = _round_up(max(M, 1), 8)
    tm_eff = min(_round_up(tm, 8), Mp8)
    while tm_eff > 8 and Mp8 // tm_eff < 2:
        tm_eff = max(8, _round_up(tm_eff // 2, 8))
    Mp = _round_up(M, tm_eff)
    return tm_eff, Mp


# --------------------------------------------------------------------------
# Kernels
# --------------------------------------------------------------------------
def _ffn_resident_kernel(x_ref, gamma_ref, beta_ref, w1_ref, b1_ref, w2_ref,
                         b2_ref, o_ref, *, d_model, swish_dtype):
    """Weights fully resident in VMEM; one grid axis over row tiles."""
    x = x_ref[...].astype(jnp.float32)
    inv_d = 1.0 / d_model

    # Fused LayerNorm statistics (one pass).  Padded feature lanes of x are
    # exactly zero, so sums over the padded width equal sums over d_model.
    s1 = jnp.sum(x, axis=-1, keepdims=True)
    s2 = jnp.sum(x * x, axis=-1, keepdims=True)
    mean = s1 * inv_d
    var = jnp.maximum(s2 * inv_d - mean * mean, 0.0)
    y = (x - mean) * lax.rsqrt(var + 1e-5)
    # gamma/beta are zero in padded lanes -> y is zero there.
    y = y * gamma_ref[...] + beta_ref[...]

    # hidden_layer on the MXU (f32 accumulate) + Swish.
    h = jnp.dot(y.astype(w1_ref.dtype), w1_ref[...],
                preferred_element_type=jnp.float32) + b1_ref[...]
    h = h.astype(swish_dtype)
    h = h * jax.nn.sigmoid(h)

    # TODO(synk): dropout is identity here (p=0.0 / eval mode); stochastic
    # dropout would use pltpu.prng_seed + pltpu.stateful_bernoulli.

    out = jnp.dot(h.astype(w2_ref.dtype), w2_ref[...],
                  preferred_element_type=jnp.float32) + b2_ref[...]
    o_ref[...] = (x + 0.5 * out).astype(o_ref.dtype)


def _ffn_tiled_kernel(x_ref, gamma_ref, beta_ref, w1_ref, b1_ref, w2_ref,
                      b2_ref, o_ref, y_scr, acc_scr, *, d_model, swish_dtype):
    """Hidden-dim streamed: grid = (row tiles, Hp // th), weights in slabs."""
    k = pl.program_id(1)

    @pl.when(k == 0)
    def _():
        x = x_ref[...].astype(jnp.float32)
        inv_d = 1.0 / d_model
        s1 = jnp.sum(x, axis=-1, keepdims=True)
        s2 = jnp.sum(x * x, axis=-1, keepdims=True)
        mean = s1 * inv_d
        var = jnp.maximum(s2 * inv_d - mean * mean, 0.0)
        y = (x - mean) * lax.rsqrt(var + 1e-5)
        y_scr[...] = (y * gamma_ref[...] + beta_ref[...]).astype(y_scr.dtype)
        acc_scr[...] = jnp.zeros_like(acc_scr)

    h = jnp.dot(y_scr[...], w1_ref[...],
                preferred_element_type=jnp.float32) + b1_ref[...]
    h = h.astype(swish_dtype)
    h = h * jax.nn.sigmoid(h)
    acc_scr[...] += jnp.dot(h.astype(w2_ref.dtype), w2_ref[...],
                            preferred_element_type=jnp.float32)

    @pl.when(k == pl.num_programs(1) - 1)
    def _():
        x = x_ref[...].astype(jnp.float32)
        out = acc_scr[...] + b2_ref[...]
        o_ref[...] = (x + 0.5 * out).astype(o_ref.dtype)


# --------------------------------------------------------------------------
# Wrapper
# --------------------------------------------------------------------------
def make_feed_forward(params, *, tm=512, matmul_dtype=jnp.bfloat16,
                      io_dtype=None, force_hidden_tiling=False):
    """Pads/casts the weights once and returns a jitted callable x -> out.

    params: {"gamma": (1,D), "beta": (1,D), "w1": (D,H), "b1": (1,H),
             "w2": (H,D), "b2": (1,D)}
    """
    D, H = params["w1"].shape
    Dp = _round_up(D, 128)
    Hp = _round_up(H, 128)
    f32 = jnp.float32

    # One-time padding / casting (lane-dense, zero-padded) -- not per call.
    gamma = jnp.pad(params["gamma"].reshape(1, D).astype(f32), ((0, 0), (0, Dp - D)))
    beta = jnp.pad(params["beta"].reshape(1, D).astype(f32), ((0, 0), (0, Dp - D)))
    w1 = jnp.pad(params["w1"], ((0, Dp - D), (0, Hp - H))).astype(matmul_dtype)
    b1 = jnp.pad(params["b1"].reshape(1, H).astype(f32), ((0, 0), (0, Hp - H)))
    w2 = jnp.pad(params["w2"], ((0, Hp - H), (0, Dp - D))).astype(matmul_dtype)
    b2 = jnp.pad(params["b2"].reshape(1, D).astype(f32), ((0, 0), (0, Dp - D)))

    swish_dtype = _default_swish_dtype(matmul_dtype)
    w_bytes = jnp.dtype(matmul_dtype).itemsize
    budget = int(_physical_vmem_bytes() * 0.75)   # headroom for compiler temps

    def _plan(M, x_dtype):
        io_dt = jnp.dtype(io_dtype) if io_dtype is not None else jnp.dtype(x_dtype)
        io_b = io_dt.itemsize
        tm_eff, Mp = _pick_tile(M, tm)

        def resident_bytes(tm_):
            return (4 * tm_ * Dp * io_b                      # double-buffered in/out tiles
                    + 2 * (Dp * Hp + Hp * Dp) * w_bytes      # weights (assume 2 buffers)
                    + 2 * (Hp + 3 * Dp) * 4                  # biases / gamma / beta
                    + 3 * tm_ * Dp * 4 + 2 * tm_ * Hp * 4)   # f32 intermediates headroom

        def tiled_bytes(tm_, th_):
            return (4 * tm_ * Dp * io_b
                    + 2 * (Dp * th_ + th_ * Dp) * w_bytes    # streamed weight slabs
                    + 2 * (2 * th_ + 3 * Dp) * 4
                    + tm_ * Dp * (w_bytes + 4)               # y scratch + f32 accumulator
                    + 2 * tm_ * th_ * 4 + tm_ * Dp * 4)      # intermediates headroom

        use_tiled = force_hidden_tiling or resident_bytes(tm_eff) > budget
        th = None
        if use_tiled:
            while True:
                th = next((t for t in (2048, 1024, 512, 256, 128)
                           if Hp % t == 0 and tiled_bytes(tm_eff, t) <= budget), None)
                if th is not None or tm_eff <= 8:
                    break
                tm_eff = max(8, _round_up(tm_eff // 2, 8))
            if th is None:
                th = 128
            Mp = _round_up(M, tm_eff)

        needed = tiled_bytes(tm_eff, th) if use_tiled else resident_bytes(tm_eff)
        vmem_limit = int(min(max(needed * 5 // 4, 32 << 20), budget))
        return io_dt, tm_eff, Mp, use_tiled, th, vmem_limit

    @jax.jit
    def fwd(x):
        orig_dtype = x.dtype
        B, S, D_in = x.shape
        assert D_in == D, "feature dim mismatch with prepared params"
        M = B * S
        io_dt, tm_eff, Mp, use_tiled, th, vmem_limit = _plan(M, x.dtype)

        x2 = x.reshape(M, D)
        needs_copy = (Mp != M) or (Dp != D) or (x2.dtype != io_dt)
        if needs_copy:
            x2 = jnp.pad(x2.astype(io_dt), ((0, Mp - M), (0, Dp - D)))

        cost = pl.CostEstimate(
            flops=4 * Mp * Dp * Hp,
            transcendentals=Mp * Hp,
            bytes_accessed=2 * Mp * Dp * io_dt.itemsize + 2 * Dp * Hp * w_bytes,
        )
        common = dict(
            out_shape=jax.ShapeDtypeStruct((Mp, Dp), io_dt),
            cost_estimate=cost,
            # Only alias when x2 is a fresh padded/cast intermediate.
            input_output_aliases=({0: 0} if needs_copy else {}),
        )

        if not use_tiled:
            kernel = functools.partial(_ffn_resident_kernel, d_model=D,
                                       swish_dtype=swish_dtype)
            grid_spec = pltpu.PrefetchScalarGridSpec(
                num_scalar_prefetch=0,
                grid=(Mp // tm_eff,),
                in_specs=[
                    pl.BlockSpec((tm_eff, Dp), lambda i: (i, 0)),   # x tile
                    pl.BlockSpec((1, Dp), lambda i: (0, 0)),        # gamma
                    pl.BlockSpec((1, Dp), lambda i: (0, 0)),        # beta
                    pl.BlockSpec((Dp, Hp), lambda i: (0, 0)),       # w1 (resident)
                    pl.BlockSpec((1, Hp), lambda i: (0, 0)),        # b1
                    pl.BlockSpec((Hp, Dp), lambda i: (0, 0)),       # w2 (resident)
                    pl.BlockSpec((1, Dp), lambda i: (0, 0)),        # b2
                ],
                out_specs=pl.BlockSpec((tm_eff, Dp), lambda i: (i, 0)),
            )
            out = pl.pallas_call(
                kernel, grid_spec=grid_spec,
                compiler_params=pltpu.CompilerParams(
                    dimension_semantics=("parallel",),
                    vmem_limit_bytes=vmem_limit),
                **common,
            )(x2, gamma, beta, w1, b1, w2, b2)
        else:
            kernel = functools.partial(_ffn_tiled_kernel, d_model=D,
                                       swish_dtype=swish_dtype)
            grid_spec = pltpu.PrefetchScalarGridSpec(
                num_scalar_prefetch=0,
                grid=(Mp // tm_eff, Hp // th),
                in_specs=[
                    pl.BlockSpec((tm_eff, Dp), lambda i, k: (i, 0)),  # x tile (resident over k)
                    pl.BlockSpec((1, Dp), lambda i, k: (0, 0)),       # gamma
                    pl.BlockSpec((1, Dp), lambda i, k: (0, 0)),       # beta
                    pl.BlockSpec((Dp, th), lambda i, k: (0, k)),      # w1 slab
                    pl.BlockSpec((1, th), lambda i, k: (0, k)),       # b1 slab
                    pl.BlockSpec((th, Dp), lambda i, k: (k, 0)),      # w2 slab
                    pl.BlockSpec((1, Dp), lambda i, k: (0, 0)),       # b2
                ],
                out_specs=pl.BlockSpec((tm_eff, Dp), lambda i, k: (i, 0)),
                scratch_shapes=[
                    pltpu.VMEM((tm_eff, Dp), matmul_dtype),   # LayerNormed y
                    pltpu.VMEM((tm_eff, Dp), jnp.float32),    # second-matmul accumulator
                ],
            )
            out = pl.pallas_call(
                kernel, grid_spec=grid_spec,
                compiler_params=pltpu.CompilerParams(
                    dimension_semantics=("parallel", "arbitrary"),
                    vmem_limit_bytes=vmem_limit),
                **common,
            )(x2, gamma, beta, w1, b1, w2, b2)

        if needs_copy:
            out = out[:M, :D]
        return out.reshape(B, S, D).astype(orig_dtype)

    return fwd


def feed_forward_module(x, params, **kwargs):
    """One-shot convenience wrapper (re-prepares the weights each call)."""
    return make_feed_forward(params, **kwargs)(x)


# --------------------------------------------------------------------------
# Params / reference / test
# --------------------------------------------------------------------------
def init_params(key, dim, n_factors=4):
    hidden = n_factors * dim
    k1, k2, k3, k4 = jax.random.split(key, 4)
    lim1 = 1.0 / (dim ** 0.5)
    lim2 = 1.0 / (hidden ** 0.5)
    return {
        "gamma": jnp.ones((1, dim), jnp.float32),
        "beta": jnp.zeros((1, dim), jnp.float32),
        "w1": jax.random.uniform(k1, (dim, hidden), jnp.float32, -lim1, lim1),
        "b1": jax.random.uniform(k2, (1, hidden), jnp.float32, -lim1, lim1),
        "w2": jax.random.uniform(k3, (hidden, dim), jnp.float32, -lim2, lim2),
        "b2": jax.random.uniform(k4, (1, dim), jnp.float32, -lim2, lim2),
    }


def reference(x, p):
    mean = jnp.mean(x, axis=-1, keepdims=True)
    var = jnp.mean((x - mean) ** 2, axis=-1, keepdims=True)
    y = (x - mean) / jnp.sqrt(var + 1e-5) * p["gamma"][0] + p["beta"][0]
    h = y @ p["w1"] + p["b1"][0]
    h = h * jax.nn.sigmoid(h)
    out = h @ p["w2"] + p["b2"][0]
    return x + 0.5 * out


if __name__ == "__main__":
    key = jax.random.PRNGKey(0)
    kx, kp = jax.random.split(key)

    batch, seq, dim, n_factors = 2, 8, 32, 4
    x = jax.random.normal(kx, (batch, seq, dim), jnp.float32)
    params = init_params(kp, dim, n_factors)
    ref = reference(x, params)

    # Strict semantic check: f32 matmuls, f32 HBM I/O (x.dtype), resident weights.
    ffn_f32 = make_feed_forward(params, matmul_dtype=jnp.float32)
    out_f32 = jax.block_until_ready(ffn_f32(x))
    assert out_f32.shape == x.shape
    assert jnp.allclose(out_f32, ref, atol=1e-4, rtol=1e-4), "f32 mismatch vs reference"

    # Perf path: bf16 MXU inputs + bf16 HBM I/O, f32 accumulation.
    ffn_bf16 = make_feed_forward(params, matmul_dtype=jnp.bfloat16,
                                 io_dtype=jnp.bfloat16)
    out_bf16 = jax.block_until_ready(ffn_bf16(x))
    assert out_bf16.shape == x.shape
    assert jnp.allclose(out_bf16.astype(jnp.float32), ref, atol=5e-2, rtol=5e-2), \
        "bf16 mismatch vs reference"

    # Exercise the hidden-dim-tiled (streamed-weights / v7x large-D) schedule too.
    ffn_tiled = make_feed_forward(params, matmul_dtype=jnp.bfloat16,
                                  io_dtype=jnp.bfloat16, force_hidden_tiling=True)
    out_tiled = jax.block_until_ready(ffn_tiled(x))
    assert out_tiled.shape == x.shape
    assert jnp.allclose(out_tiled.astype(jnp.float32), ref, atol=5e-2, rtol=5e-2), \
        "tiled-path mismatch vs reference"

    print("KERNEL_OK")
</pallas_src>

<mosaic_0001>
module attributes {stable_mosaic.version = 11 : i64} {
  func.func @_ffn_resident_kernel(%arg0: i32, %arg1: memref<8x128xf32, #tpu.memory_space<vmem>>, %arg2: memref<1x128xf32, #tpu.memory_space<vmem>>, %arg3: memref<1x128xf32, #tpu.memory_space<vmem>>, %arg4: memref<128x128xf32, #tpu.memory_space<vmem>>, %arg5: memref<1x128xf32, #tpu.memory_space<vmem>>, %arg6: memref<128x128xf32, #tpu.memory_space<vmem>>, %arg7: memref<1x128xf32, #tpu.memory_space<vmem>>, %arg8: memref<8x128xf32, #tpu.memory_space<vmem>>) attributes {dimension_semantics = [#tpu.dimension_semantics<parallel>], iteration_bounds = array<i64: 2>, scalar_prefetch = 0 : i64, scratch_operands = 0 : i64, tpu.core_type = #tpu.core_type<tc>, window_params = [{transform_indices = @transform_0, window_bounds = array<i64: 8, 128>}, {pipeline_mode = #tpu.pipeline_mode<synchronous>, transform_indices = @transform_1, window_bounds = array<i64: 1, 128>}, {pipeline_mode = #tpu.pipeline_mode<synchronous>, transform_indices = @transform_2, window_bounds = array<i64: 1, 128>}, {pipeline_mode = #tpu.pipeline_mode<synchronous>, transform_indices = @transform_3, window_bounds = array<i64: 128, 128>}, {pipeline_mode = #tpu.pipeline_mode<synchronous>, transform_indices = @transform_4, window_bounds = array<i64: 1, 128>}, {pipeline_mode = #tpu.pipeline_mode<synchronous>, transform_indices = @transform_5, window_bounds = array<i64: 128, 128>}, {pipeline_mode = #tpu.pipeline_mode<synchronous>, transform_indices = @transform_6, window_bounds = array<i64: 1, 128>}, {transform_indices = @transform_7, window_bounds = array<i64: 8, 128>}]} {
    %c0 = arith.constant 0 : index
    %c0_0 = arith.constant 0 : index
    %0 = vector.load %arg1[%c0, %c0_0] : memref<8x128xf32, #tpu.memory_space<vmem>>, vector<8x128xf32>
    %cst = arith.constant dense<0.000000e+00> : vector<8xf32>
    %1 = vector.multi_reduction <add>, %0, %cst [1] : vector<8x128xf32> to vector<8xf32>
    %2 = vector.shape_cast %1 : vector<8xf32> to vector<8x1xf32>
    %3 = arith.mulf %0, %0 : vector<8x128xf32>
    %cst_1 = arith.constant dense<0.000000e+00> : vector<8xf32>
    %4 = vector.multi_reduction <add>, %3, %cst_1 [1] : vector<8x128xf32> to vector<8xf32>
    %5 = vector.shape_cast %4 : vector<8xf32> to vector<8x1xf32>
    %cst_2 = arith.constant 3.125000e-02 : f32
    %6 = vector.broadcast %cst_2 : f32 to vector<8x1xf32>
    %7 = arith.mulf %2, %6 : vector<8x1xf32>
    %cst_3 = arith.constant 3.125000e-02 : f32
    %8 = vector.broadcast %cst_3 : f32 to vector<8x1xf32>
    %9 = arith.mulf %5, %8 : vector<8x1xf32>
    %10 = arith.mulf %7, %7 : vector<8x1xf32>
    %11 = arith.subf %9, %10 : vector<8x1xf32>
    %cst_4 = arith.constant 0.000000e+00 : f32
    %12 = vector.broadcast %cst_4 : f32 to vector<8x1xf32>
    %13 = arith.maximumf %11, %12 : vector<8x1xf32>
    %14 = vector.broadcast %7 : vector<8x1xf32> to vector<8x128xf32>
    %15 = arith.subf %0, %14 : vector<8x128xf32>
    %cst_5 = arith.constant 9.99999974E-6 : f32
    %16 = vector.broadcast %cst_5 : f32 to vector<8x1xf32>
    %17 = arith.addf %13, %16 : vector<8x1xf32>
    %18 = math.rsqrt %17 : vector<8x1xf32>
    %19 = vector.broadcast %18 : vector<8x1xf32> to vector<8x128xf32>
    %20 = arith.mulf %15, %19 : vector<8x128xf32>
    %c0_6 = arith.constant 0 : index
    %c0_7 = arith.constant 0 : index
    %21 = vector.load %arg2[%c0_6, %c0_7] : memref<1x128xf32, #tpu.memory_space<vmem>>, vector<1x128xf32>
    %22 = vector.broadcast %21 : vector<1x128xf32> to vector<8x128xf32>
    %23 = arith.mulf %20, %22 : vector<8x128xf32>
    %c0_8 = arith.constant 0 : index
    %c0_9 = arith.constant 0 : index
    %24 = vector.load %arg3[%c0_8, %c0_9] : memref<1x128xf32, #tpu.memory_space<vmem>>, vector<1x128xf32>
    %25 = vector.broadcast %24 : vector<1x128xf32> to vector<8x128xf32>
    %26 = arith.addf %23, %25 : vector<8x128xf32>
    %c0_10 = arith.constant 0 : index
    %c0_11 = arith.constant 0 : index
    %27 = vector.load %arg4[%c0_10, %c0_11] : memref<128x128xf32, #tpu.memory_space<vmem>>, vector<128x128xf32>
    %cst_12 = arith.constant dense<0.000000e+00> : vector<8x128xf32>
    %28 = tpu.matmul %26, %27, %cst_12 {dimension_numbers = #tpu.dot_dimension_numbers<[1], [0], [0], [1], [0, 0, 1, 1], [], []>} : vector<8x128xf32>, vector<128x128xf32>, vector<8x128xf32> -> vector<8x128xf32>
    %c0_13 = arith.constant 0 : index
    %c0_14 = arith.constant 0 : index
    %29 = vector.load %arg5[%c0_13, %c0_14] : memref<1x128xf32, #tpu.memory_space<vmem>>, vector<1x128xf32>
    %30 = vector.broadcast %29 : vector<1x128xf32> to vector<8x128xf32>
    %31 = arith.addf %28, %30 : vector<8x128xf32>
    %32 = arith.negf %31 : vector<8x128xf32>
    %33 = math.exp %32 : vector<8x128xf32>
    %cst_15 = arith.constant 1.000000e+00 : f32
    %34 = vector.broadcast %cst_15 : f32 to vector<8x128xf32>
    %35 = arith.addf %34, %33 : vector<8x128xf32>
    %36 = arith.divf %34, %35 : vector<8x128xf32>
    %37 = arith.mulf %31, %36 : vector<8x128xf32>
    %c0_16 = arith.constant 0 : index
    %c0_17 = arith.constant 0 : index
    %38 = vector.load %arg6[%c0_16, %c0_17] : memref<128x128xf32, #tpu.memory_space<vmem>>, vector<128x128xf32>
    %cst_18 = arith.constant dense<0.000000e+00> : vector<8x128xf32>
    %39 = tpu.matmul %37, %38, %cst_18 {dimension_numbers = #tpu.dot_dimension_numbers<[1], [0], [0], [1], [0, 0, 1, 1], [], []>} : vector<8x128xf32>, vector<128x128xf32>, vector<8x128xf32> -> vector<8x128xf32>
    %c0_19 = arith.constant 0 : index
    %c0_20 = arith.constant 0 : index
    %40 = vector.load %arg7[%c0_19, %c0_20] : memref<1x128xf32, #tpu.memory_space<vmem>>, vector<1x128xf32>
    %41 = vector.broadcast %40 : vector<1x128xf32> to vector<8x128xf32>
    %42 = arith.addf %39, %41 : vector<8x128xf32>
    %cst_21 = arith.constant 5.000000e-01 : f32
    %43 = vector.broadcast %cst_21 : f32 to vector<8x128xf32>
    %44 = arith.mulf %43, %42 : vector<8x128xf32>
    %45 = arith.addf %0, %44 : vector<8x128xf32>
    %c0_22 = arith.constant 0 : index
    %c0_23 = arith.constant 0 : index
    %46 = vector.load %arg8[%c0_22, %c0_23] : memref<8x128xf32, #tpu.memory_space<vmem>>, vector<8x128xf32>
    tpu.vector_store %arg8[%c0_22, %c0_23], %45 {strides = array<i32>} : memref<8x128xf32, #tpu.memory_space<vmem>>, vector<8x128xf32>,
    return
  }
  func.func @transform_0(%arg0: i32) -> (i32, i32) {
    %c0_i32 = arith.constant 0 : i32
    %c0_i32_0 = arith.constant 0 : i32
    return %arg0, %c0_i32 : i32, i32
  }
  func.func @transform_1(%arg0: i32) -> (i32, i32) {
    %c0_i32 = arith.constant 0 : i32
    %c0_i32_0 = arith.constant 0 : i32
    %c0_i32_1 = arith.constant 0 : i32
    return %c0_i32, %c0_i32_0 : i32, i32
  }
  func.func @transform_2(%arg0: i32) -> (i32, i32) {
    %c0_i32 = arith.constant 0 : i32
    %c0_i32_0 = arith.constant 0 : i32
    %c0_i32_1 = arith.constant 0 : i32
    return %c0_i32, %c0_i32_0 : i32, i32
  }
  func.func @transform_3(%arg0: i32) -> (i32, i32) {
    %c0_i32 = arith.constant 0 : i32
    %c0_i32_0 = arith.constant 0 : i32
    %c0_i32_1 = arith.constant 0 : i32
    return %c0_i32, %c0_i32_0 : i32, i32
  }
  func.func @transform_4(%arg0: i32) -> (i32, i32) {
    %c0_i32 = arith.constant 0 : i32
    %c0_i32_0 = arith.constant 0 : i32
    %c0_i32_1 = arith.constant 0 : i32
    return %c0_i32, %c0_i32_0 : i32, i32
  }
  func.func @transform_5(%arg0: i32) -> (i32, i32) {
    %c0_i32 = arith.constant 0 : i32
    %c0_i32_0 = arith.constant 0 : i32
    %c0_i32_1 = arith.constant 0 : i32
    return %c0_i32, %c0_i32_0 : i32, i32
  }
  func.func @transform_6(%arg0: i32) -> (i32, i32) {
    %c0_i32 = arith.constant 0 : i32
    %c0_i32_0 = arith.constant 0 : i32
    %c0_i32_1 = arith.constant 0 : i32
    return %c0_i32, %c0_i32_0 : i32, i32
  }
  func.func @transform_7(%arg0: i32) -> (i32, i32) {
    %c0_i32 = arith.constant 0 : i32
    %c0_i32_0 = arith.constant 0 : i32
    return %arg0, %c0_i32 : i32, i32
  }
}

</mosaic_0001>

<bundles_post_ra>
// kernel: fwd.1
= control target key start
LH: loop header
LB: loop body
LE: loop exit
PB: predicated region body
PF: predicated region fallthrough
CT: control target
= control target key end

     0   :  { %12 = vsyncpa [#allocation3], 0  ;;  %s1070_s0 = inlined_call_operand.vmem [shape: f32[16,128], index: 0, kind: input, shape index: {}, may-alias: {0,7}]   ;;  %s1071_s1 = inlined_call_operand.vmem [shape: f32[1,128], index: 1, kind: input, shape index: {}]   ;;  %s1072_s2 = inlined_call_operand.vmem [shape: f32[1,128], index: 2, kind: input, shape index: {}]   ;;  %s1073_s3 = inlined_call_operand.hbm [shape: f32[128,128], index: 3, kind: input, shape index: {}]   ;;  %s1074_s4 = inlined_call_operand.vmem [shape: f32[1,128], index: 4, kind: input, shape index: {}]   ;;  %s1075_s5 = inlined_call_operand.hbm [shape: f32[128,128], index: 5, kind: input, shape index: {}]   ;;  %s1076_s6 = inlined_call_operand.vmem [shape: f32[1,128], index: 6, kind: input, shape index: {}]   ;;  %s1077_s7 = inlined_call_operand.vmem [shape: f32[16,128], index: 7, kind: output, shape index: {}, may-alias: {0,7}]  }
   0x1   :  { %13 = vsyncpa [#allocation5], 0  ;;  %s935_s24 = smov 0  }
   0x2 LB: > { %s941_s25 = sadd.s32 4294967295, %s886_s24   ;;  %p608_p0 = scmp.ge.s32.totalorder %s886_s24, 1  ;;  %s886_s24 = sphi %s935_s24, %s19_s24  }
   0x3   : > { %p202_p1 = scmp.lt.s32.totalorder %s886_s24, 3  ;;  %s888_s26 = smov [#allocation2]  }
   0x4   : > { %s220_s27 = sshll.u32 %s888_s26, 4  ;;  %p1078_p3 = scmp.eq.s32.totalorder %s941_s25, 0  ;;  %s221_s27 = int_to_ptr.vmem [resolvable:$true] %s220_s27 }
   0x5   : > { %p945_p2 = pnand %p608_p0, %p202_p1  ;;  %s889_s29 = smov [#allocation4]  }
   0x6   : > { %s236_s30 = sshll.u32 %s889_s29, 4  ;;  %s816_s11 = scalar_lea.hbm %s1073_s3, 2048  ;;  %s958_s30 = int_to_ptr.vmem [resolvable:$true] %s236_s30 }
   0x7   : > { %s1080_s28 = scalar_select %p945_p2, 1, 0 }
   0x8   : > { %p784_p4 = pneg %p945_p2  ;;  %p817_p6 = scmp.ne.s32.totalorder %s1073_s3, %s816_s11 }
   0x9   : > { %p823_p10 = scmp.lt.u32.totalorder %s816_s11, %s1073_s3 }
   0xa   : > { %p954_p5 = pnand %p1078_p3, %p784_p4 }
   0xc   : > { %p818_p7 = pneg %p954_p5 }
   0xe   : > { %p819_p8 = pnand %p818_p7, %p817_p6 }
  0x10   : > { %p820_p9 = pneg %p819_p8 }
  0x12   : > { %p825_p11 = pnand %p823_p10, %p820_p9 }
  0x14   : > { %828 = shalt.err (!%p825_p11)
}
  0x15   : > { %s829_s16 = scalar_lea.vmem %s221_s27, 2048  ;;  %p837_p1 = scmp.lt.s32.totalorder %s221_s27, %s221_s27 }
  0x16   : > { %p830_p12 = scmp.ne.s32.totalorder %s221_s27, %s829_s16  ;;  %p838_p4 = scmp.lt.s32.totalorder %s829_s16, %s829_s16 }
  0x18   : > { %p832_p13 = pnand %p830_p12, %p818_p7  ;;  %p839_p3 = por %p838_p4, %p837_p1 }
  0x1a   : > { %p833_p0 = pneg %p832_p13 }
  0x1c   : > { %p840_p2 = pnand %p839_p3, %p833_p0 }
  0x1e   : > { %843 = shalt.err (!%p840_p2)
}
  0x1f   : > { %s890_s17 = smov 128   ;;  %s891_s18 = smov 8  }
  0x20   : > { %787 = dma.hbm_to_vmem [thread:$0]  (!%p954_p5), %s1073_s3, 2048, %s221_s27, [#allocation3], %s890_s17, %s890_s17, %s891_s18  }
  0x21   : > { %s844_s23 = scalar_lea.hbm %s1075_s5, 2048 }
  0x22   : > { %p845_p6 = scmp.ne.s32.totalorder %s1075_s5, %s844_s23  ;;  %p851_p8 = scmp.lt.u32.totalorder %s844_s23, %s1075_s5 }
  0x24   : > { %p847_p2 = pnand %p845_p6, %p818_p7 }
  0x26   : > { %p848_p3 = pneg %p847_p2 }
  0x28   : > { %p853_p9 = pnand %p851_p8, %p848_p3 }
  0x2a   : > { %856 = shalt.err (!%p853_p9)
}
  0x2b   : > { %s857_s27 = scalar_lea.vmem %s958_s30, 2048  ;;  %p865_p13 = scmp.lt.s32.totalorder %s958_s30, %s958_s30 }
  0x2c   : > { %p858_p10 = scmp.ne.s32.totalorder %s958_s30, %s857_s27  ;;  %p866_p0 = scmp.lt.s32.totalorder %s857_s27, %s857_s27 }
  0x2e   : > { %p860_p11 = pnand %p858_p10, %p818_p7  ;;  %p867_p1 = por %p866_p0, %p865_p13 }
  0x30   : > { %p861_p12 = pneg %p860_p11 }
  0x32   : > { %p868_p4 = pnand %p867_p1, %p861_p12 }
  0x34   : > { %871 = shalt.err (!%p868_p4)
}
  0x35   : > { %790 = dma.hbm_to_vmem [thread:$0]  (!%p954_p5), %s1075_s5, 2048, %s958_s30, [#allocation5], %s890_s17, %s890_s17, %s891_s18  }
  0x36   : > { %p1082_p6 = scmp.ne.s32.totalorder %s1080_s28, 0 }
  0x37   : > { %p1083_p2 = scmp.eq.s32.totalorder (!%p1082_p6), %s941_s25, 0 }
  0x38   : > { %262 = sbr.rel (%p1082_p6) target bundleno = 705 (0x2c1), region = 48 }
  0x3f   : > { %877 = dma.done.wait (%p1083_p2), [#allocation3], 2048   ;;  %p1084_p7 = pmov %p1083_p2 }
  0x40   : > { %p1085_p3 = pmov %p1083_p2 }
  0x41   : > { %879 = vsyncadd (%p1084_p7), [#allocation3], 4294965248 }
  0x42   : > { %881 = dma.done.wait (%p1085_p3), [#allocation5], 2048   ;;  %p1086_p8 = pmov %p1083_p2 }
  0x43   : > { %p296_p9 = scmp.lt.s32.totalorder %s941_s25, 1  ;;  %v892_v0 = vmov 0.0|0.0   ;;  %v335_v2 = vld [vmem:[#allocation2] sm:$0xff]  ;;  %v336_v3 = vld [vmem:[#allocation2 + $0x8] sm:$0xff]  ;;  %v337_v6 = vld [vmem:[#allocation2 + $0x10] sm:$0xff]  ;;  %vm893_vm0 = vmmov 0  }
  0x44   : > { %883 = vsyncadd (%p1086_p8), [#allocation5], 4294965248  ;;  %728 = vmatprep.subr.bf16.mxu0 %v892_v0  ;;  %752 = vmatprep.subr.bf16.mxu1 %v892_v0  ;;  %v729_v5 = vpack.c.bf16 %v336_v3, %v335_v2  ;;  %v338_v7 = vld [vmem:[#allocation2 + $0x18] sm:$0xff]  ;;  %v339_v9 = vld [vmem:[#allocation2 + $0x20] sm:$0xff]  ;;  %v894_v20 = vmov 0.0  }
  0x45   : > { %s1088_s25 = smov (!%p296_p9, %s941_s25), 1  ;;  %v732_v8 = vpack.c.bf16 %v338_v7, %v337_v6  ;;  %v340_v10 = vld [vmem:[#allocation2 + $0x28] sm:$0xff]  ;;  %v341_v12 = vld [vmem:[#allocation2 + $0x30] sm:$0xff]  ;;  %v342_v13 = vld [vmem:[#allocation2 + $0x38] sm:$0xff]  ;;  %690 = vmatprep.mubr.msk.f32.mxu0 %vm893_vm0, %v894_v20  ;;  %725 = vmatprep.mubr.msk.f32.mxu1 %vm893_vm0, %v894_v20 }
  0x46   : > { %s615_s28 = sshll.u32 %s1088_s25, 3  ;;  %730 = vmatpush3.bf16.msra.mxu0 %v729_v5  ;;  %v735_v11 = vpack.c.bf16 %v340_v10, %v339_v9  ;;  %v738_v14 = vpack.c.bf16 %v342_v13, %v341_v12  ;;  %v343_v15 = vld [vmem:[#allocation2 + $0x40] sm:$0xff]  ;;  %v344_v16 = vld [vmem:[#allocation2 + $0x48] sm:$0xff]  ;;  %v345_v18 = vld [vmem:[#allocation2 + $0x50] sm:$0xff] }
  0x47   : > { %s299_s13 = scalar_lea.vmem %s1070_s0, %s615_s28  ;;  %731 = vmatprep.subr.bf16.mxu0 %v892_v0  ;;  %v741_v17 = vpack.c.bf16 %v344_v16, %v343_v15  ;;  %v346_v19 = vld [vmem:[#allocation2 + $0x58] sm:$0xff]  ;;  %v347_v22 = vld [vmem:[#allocation2 + $0x60] sm:$0xff]  ;;  %v348_v23 = vld [vmem:[#allocation2 + $0x68] sm:$0xff]  ;;  %s303_s26 = scalar_lea.vmem %s1077_s7, %s615_s28 }
  0x48   : > { %v1029_v1 = vld [vmem:[%s299_s13] sm:$0xff]  ;;  %v744_v21 = vpack.c.bf16 %v346_v19, %v345_v18  ;;  %v747_v24 = vpack.c.bf16 %v348_v23, %v347_v22  ;;  %v349_v25 = vld [vmem:[#allocation2 + $0x70] sm:$0xff]  ;;  %v350_v26 = vld [vmem:[#allocation2 + $0x78] sm:$0xff] }
  0x49   : > { %305 = vadd.xlane.f32.xlu0 %v1029_v1  ;;  %v307_v4 = vmul.f32 %v1029_v1, %v1029_v1  ;;  %v750_v27 = vpack.c.bf16 %v350_v26, %v349_v25  ;;  %v617_v38 = vld [vmem:[%s1071_s1] ss:$0 sm:$0xff]  ;;  %v436_v44 = vld [vmem:[#allocation4 + $0x8] sm:$0xff]  ;;  %v437_v46 = vld [vmem:[#allocation4 + $0x10] sm:$0xff] }
  0x4a   : > { %733 = vmatpush3.bf16.msra.mxu0 %v732_v8  ;;  %v618_v40 = vld [vmem:[%s1072_s2] ss:$0 sm:$0xff]  ;;  %v438_v47 = vld [vmem:[#allocation4 + $0x18] sm:$0xff]  ;;  %v440_v50 = vld [vmem:[#allocation4 + $0x28] sm:$0xff] }
  0x4b   : > { %734 = vmatprep.subr.bf16.mxu0 %v892_v0  ;;  %v435_v43 = vld [vmem:[#allocation4] sm:$0xff]  ;;  %v756_v48 = vpack.c.bf16 %v438_v47, %v437_v46  ;;  %v441_v52 = vld [vmem:[#allocation4 + $0x30] sm:$0xff]  ;;  %v442_v53 = vld [vmem:[#allocation4 + $0x38] sm:$0xff] }
  0x4c   : > { %v753_v45 = vpack.c.bf16 %v436_v44, %v435_v43  ;;  %v439_v49 = vld [vmem:[#allocation4 + $0x20] sm:$0xff]  ;;  %v762_v54 = vpack.c.bf16 %v442_v53, %v441_v52  ;;  %v444_v56 = vld [vmem:[#allocation4 + $0x48] sm:$0xff]  ;;  %v445_v58 = vld [vmem:[#allocation4 + $0x50] sm:$0xff] }
  0x4d   : > { %308 = vadd.xlane.f32.xlu0 %v307_v4  ;;  %v759_v51 = vpack.c.bf16 %v440_v50, %v439_v49  ;;  %v443_v55 = vld [vmem:[#allocation4 + $0x40] sm:$0xff]  ;;  %v446_v59 = vld [vmem:[#allocation4 + $0x58] sm:$0xff]  ;;  %v448_v62 = vld [vmem:[#allocation4 + $0x68] sm:$0xff] }
  0x4e   : > { %736 = vmatpush3.bf16.msra.mxu0 %v735_v11  ;;  %754 = vmatpush3.bf16.msra.mxu1 %v753_v45  ;;  %v765_v57 = vpack.c.bf16 %v444_v56, %v443_v55  ;;  %v768_v60 = vpack.c.bf16 %v446_v59, %v445_v58  ;;  %v447_v61 = vld [vmem:[#allocation4 + $0x60] sm:$0xff]  ;;  %v449_v2 = vld [vmem:[#allocation4 + $0x70] sm:$0xff]  ;;  %v450_v3 = vld [vmem:[#allocation4 + $0x78] sm:$0xff] }
  0x4f   : > { %737 = vmatprep.subr.bf16.mxu0 %v892_v0  ;;  %755 = vmatprep.subr.bf16.mxu1 %v892_v0  ;;  %v771_v63 = vpack.c.bf16 %v448_v62, %v447_v61  ;;  %v774_v4 = vpack.c.bf16 %v450_v3, %v449_v2  ;;  %v619_v5 = vld [vmem:[%s1074_s4] ss:$0 sm:$0xff] }
  0x52   : > { %739 = vmatpush3.bf16.msra.mxu0 %v738_v14  ;;  %757 = vmatpush3.bf16.msra.mxu1 %v756_v48 }
  0x53   : > { %740 = vmatprep.subr.bf16.mxu0 %v892_v0  ;;  %758 = vmatprep.subr.bf16.mxu1 %v892_v0 }
  0x56   : > { %742 = vmatpush3.bf16.msra.mxu0 %v741_v17  ;;  %760 = vmatpush3.bf16.msra.mxu1 %v759_v51 }
  0x57   : > { %743 = vmatprep.subr.bf16.mxu0 %v892_v0  ;;  %761 = vmatprep.subr.bf16.mxu1 %v892_v0 }
  0x5a   : > { %745 = vmatpush3.bf16.msra.mxu0 %v744_v21  ;;  %763 = vmatpush3.bf16.msra.mxu1 %v762_v54 }
  0x5b   : > { %746 = vmatprep.subr.bf16.mxu0 %v892_v0  ;;  %764 = vmatprep.subr.bf16.mxu1 %v892_v0 }
  0x5e   : > { %748 = vmatpush3.bf16.msra.mxu0 %v747_v24  ;;  %766 = vmatpush3.bf16.msra.mxu1 %v765_v57 }
  0x5f   : > { %749 = vmatprep.subr.bf16.mxu0 %v892_v0  ;;  %767 = vmatprep.subr.bf16.mxu1 %v892_v0 }
  0x62   : > { %751 = vmatpush3.bf16.msra.mxu0 %v750_v27  ;;  %769 = vmatpush3.bf16.msra.mxu1 %v768_v60 }
  0x63   : > { %770 = vmatprep.subr.bf16.mxu1 %v892_v0 }
  0x66   : > { %772 = vmatpush3.bf16.msra.mxu1 %v771_v63 }
  0x67   : > { %773 = vmatprep.subr.bf16.mxu1 %v892_v0  ;;  %v621_v0 = vld [vmem:[%s1076_s6] ss:$0 sm:$0xff] }
  0x6a   : > { %775 = vmatpush3.bf16.msra.mxu1 %v774_v4 }
  0xd6   : > { %v306_v28 = vpop.xlane.xlu0 %305 }
  0xd7   : > { %v310_v29 = vmul.f32 0.03125, %v306_v28 }
  0xd9   : > { %v312_v31 = vmul.f32 %v310_v29, %v310_v29  ;;  %v315_v36 = vsub.f32 %v1029_v1, %v310_v29 }
  0xda   : > { %v309_v30 = vpop.xlane.xlu0 %308 }
  0xdb   : > { %v311_v32 = vmul.f32 0.03125, %v309_v30 }
  0xdd   : > { %v313_v33 = vsub.f32 %v311_v32, %v312_v31 }
  0xdf   : > { %v314_v34 = vmax.f32 %v313_v33, 0.0 }
  0xe1   : > { %v316_v35 = vadd.f32 1e-05, %v314_v34 }
  0xe3   : > { %810 = vrsqrt.f32 %v316_v35 }
  0xed   : > { %v811_v37 = vpop.eup %810 }
  0xee   : > { %v318_v39 = vmul.f32 %v811_v37, %v315_v36 }
  0xf0   : > { %v326_v41 = vmul.f32 %v617_v38, %v318_v39 }
  0xf2   : > { %v334_v42 = vadd.f32 %v618_v40, %v326_v41 }
  0xf4   : > { %691 = vmatmul.mubr.f32.vlgmr.msra.gmra.mrb[0].mxu0 %v334_v42 }
 0x1c7   : > { %v424_v6 = vpop.f32.mrb[0].mxu0 }
 0x1c8   : > { %v425_v7 = vadd.f32 %v619_v5, %v424_v6  ;;  %v692_v8 = vpop.f32.mrb[1].mxu0 }
 0x1ca   : > { %v620_v9 = vmul.f32 -1.442695, %v425_v7 }
 0x1cc   : > { %812 = vpow2.f32 %v620_v9 }
 0x1d6   : > { %v813_v10 = vpop.eup %812 }
 0x1d7   : > { %v431_v11 = vadd.f32 1.0, %v813_v10 }
 0x1d9   : > { %814 = vrcp.f32 %v431_v11 }
 0x1e3   : > { %v815_v12 = vpop.eup %814 }
 0x1e4   : > { %v434_v13 = vmul.f32 %v815_v12, %v425_v7 }
 0x1e6   : > { %726 = vmatmul.mubr.f32.vlgmr.msra.gmra.mrb[0].mxu1 %v434_v13 }
 0x2b9   : > { %v524_v14 = vpop.f32.mrb[0].mxu1 }
 0x2ba   : > { %v525_v15 = vadd.f32 %v621_v0, %v524_v14  ;;  %v727_v16 = vpop.f32.mrb[1].mxu1 }
 0x2bc   : > { %v528_v17 = vmul.f32 0.5, %v525_v15 }
 0x2be   : > { %v529_v18 = vadd.f32 %v528_v17, %v1029_v1 }
 0x2c0   : > { %530 = vst [vmem:[%s303_s26] sm:$0xff] %v529_v18 }
 0x2c1 PF: > { %s19_s24 = sadd.s32 1, %s886_s24  }
 0x2c2   : > { %p16_p5 = scmp.ge.s32.totalorder %s19_s24, 4  }
 0x2c4   :  { %18 = sbr.rel (!%p16_p5) target bundleno = 2 (0x2), region = 87 }
 0x2cb   :  { %550 = vsyncpa [#allocation3], 1 }
 0x2cc   :  { %552 = vsyncpa [#allocation3 + $0x1], 1 }
 0x2cd   :  { %553 = vsyncpa [#allocation5], 1 }

</bundles_post_ra>
